<compile_context>
chip_gen: v6e
topology: v6e:2x2x1
jax: 0.10.0
libtpu: 0.0.40
codegen_flags: <defaults>
</compile_context>

<pallas_src>
import functools
import math

import jax
import jax.numpy as jnp
from jax.experimental import pallas as pl
from jax.experimental.pallas import tpu as pltpu


def _round_up(x, m):
    return ((x + m - 1) // m) * m


def _pick_tile(n, target, unit):
    """Largest divisor of n that is a multiple of `unit` and <= target, else n."""
    target = max(1, min(target, n))
    start = target - (target % unit)
    for cand in range(start, 0, -unit):
        if n % cand == 0:
            return cand
    return n


def _agg_kernel_resident(adj_ref, m_ref, b_ref, o_ref, acc_ref, *, k_tile):
    # out[row_tile, F_p] = sum_k adj[row_tile, k_tile] @ m[k_tile, F_p] + bias
    # m is fully VMEM-resident (constant block index); slice the k window here.
    k = pl.program_id(1)

    @pl.when(k == 0)
    def _():
        acc_ref[...] = jnp.zeros_like(acc_ref)

    start = pl.multiple_of(k * k_tile, k_tile)
    acc_ref[...] += jnp.dot(
        adj_ref[...], m_ref[pl.ds(start, k_tile), :],
        preferred_element_type=jnp.float32)

    @pl.when(k == pl.num_programs(1) - 1)
    def _():
        o_ref[...] = (acc_ref[...] + b_ref[...]).astype(o_ref.dtype)


def _agg_kernel_stream(adj_ref, m_ref, b_ref, o_ref, acc_ref):
    # Fallback when m does not fit VMEM: stream one (k_tile, F_p) block per step.
    k = pl.program_id(1)

    @pl.when(k == 0)
    def _():
        acc_ref[...] = jnp.zeros_like(acc_ref)

    acc_ref[...] += jnp.dot(
        adj_ref[...], m_ref[...], preferred_element_type=jnp.float32)

    @pl.when(k == pl.num_programs(1) - 1)
    def _():
        o_ref[...] = (acc_ref[...] + b_ref[...]).astype(o_ref.dtype)


def _aggregate(adj_bf, m_bf, bias_row, out_dtype, row_tile, k_tile):
    """out = adj_bf @ m_bf + bias_row  (Pallas, K-tiled, f32 accumulation)."""
    N = adj_bf.shape[0]
    F_p = m_bf.shape[1]

    # Tile selection: divisors of N so the grid is exact; row axis gets >= 2
    # steps when possible so both v7x TensorCores have work.
    row_tile = _pick_tile(N, min(row_tile, max(8, N // 2)), 8)
    k_tile = _pick_tile(N, min(k_tile, N), 128)

    # VMEM footprint in bytes (count Pallas double-buffering on inputs/outputs).
    out_itemsize = jnp.dtype(out_dtype).itemsize
    adj_bytes = 2 * row_tile * k_tile * 2
    out_bytes = 2 * row_tile * F_p * out_itemsize
    acc_bytes = row_tile * F_p * 4
    bias_bytes = 2 * F_p * 4
    m_resident_bytes = 2 * N * F_p * 2
    m_stream_bytes = 2 * k_tile * F_p * 2

    resident_total = adj_bytes + out_bytes + acc_bytes + bias_bytes + m_resident_bytes
    use_resident = resident_total <= (44 << 20)   # safe on v7x (64 MiB physical)
    total = resident_total if use_resident else (
        adj_bytes + out_bytes + acc_bytes + bias_bytes + m_stream_bytes)
    vmem_limit = int(min(56 << 20, max(16 << 20, int(total * 1.5))))

    if use_resident:
        kernel = functools.partial(_agg_kernel_resident, k_tile=k_tile)
        m_spec = pl.BlockSpec((N, F_p), lambda i, k: (0, 0))
    else:
        kernel = _agg_kernel_stream
        m_spec = pl.BlockSpec((k_tile, F_p), lambda i, k: (k, 0))

    return pl.pallas_call(
        kernel,
        out_shape=jax.ShapeDtypeStruct((N, F_p), out_dtype),
        grid_spec=pltpu.PrefetchScalarGridSpec(
            num_scalar_prefetch=0,
            grid=(N // row_tile, N // k_tile),
            in_specs=[
                pl.BlockSpec((row_tile, k_tile), lambda i, k: (i, k)),
                m_spec,
                pl.BlockSpec((1, F_p), lambda i, k: (0, 0)),
            ],
            out_specs=pl.BlockSpec((row_tile, F_p), lambda i, k: (i, 0)),
            scratch_shapes=[pltpu.VMEM((row_tile, F_p), jnp.float32)],
        ),
        compiler_params=pltpu.CompilerParams(
            dimension_semantics=("parallel", "arbitrary"),
            vmem_limit_bytes=vmem_limit,
        ),
    )(adj_bf, m_bf, bias_row)


def gcn_conv(x, adj, weight, bias=None, *, row_tile=512, k_tile=2048):
    N, f_in = x.shape
    f_in_w, f_out = weight.shape
    assert f_in_w == f_in and adj.shape == (N, N)

    f_in_p = _round_up(f_in, 128)
    f_out_p = _round_up(f_out, 128)

    adj_bf = adj.astype(jnp.bfloat16)
    x_bf = x.astype(jnp.bfloat16)
    w_bf = weight.astype(jnp.bfloat16)
    bias_f32 = (jnp.zeros((f_out,), jnp.float32) if bias is None
                else bias.astype(jnp.float32))

    if f_in_p < f_out_p:
        # Order B: h = adj @ x (narrow intermediate), then out = h @ W + b in XLA.
        m = jnp.pad(x_bf, ((0, 0), (0, f_in_p - f_in)))
        zero_bias = jnp.zeros((1, f_in_p), jnp.float32)
        h = _aggregate(adj_bf, m, zero_bias, jnp.bfloat16, row_tile, k_tile)
        w_rows_p = jnp.pad(w_bf, ((0, f_in_p - f_in), (0, 0)))  # zero rows -> exact
        out = jnp.dot(h, w_rows_p, preferred_element_type=jnp.float32)
        return out + bias_f32[None, :]
    else:
        # Order A: support = x @ W (tiny XLA matmul), then out = adj @ support + b.
        w_p = jnp.pad(w_bf, ((0, 0), (0, f_out_p - f_out)))     # zero cols -> exact
        support = jnp.dot(
            x_bf, w_p, preferred_element_type=jnp.float32).astype(jnp.bfloat16)
        bias_row = jnp.pad(bias_f32, (0, f_out_p - f_out)).reshape(1, f_out_p)
        out_p = _aggregate(adj_bf, support, bias_row, jnp.float32, row_tile, k_tile)
        return out_p[:, :f_out]


def init_params(key, in_features, out_features):
    # Matches GCNConv.reset_parameters(): uniform(-stdv, stdv),
    # stdv = 1 / sqrt(out_features).  Deterministic via PRNGKey.
    stdv = 1.0 / math.sqrt(out_features)
    kw, kb = jax.random.split(key)
    weight = jax.random.uniform(
        kw, (in_features, out_features), jnp.float32, -stdv, stdv)
    bias = jax.random.uniform(kb, (out_features,), jnp.float32, -stdv, stdv)
    return weight, bias


if __name__ == "__main__":
    key = jax.random.PRNGKey(0)
    k_x, k_adj, k_p, k_x2, k_adj2, k_p2 = jax.random.split(key, 6)

    # --- Test 1: order A (f_in_p >= f_out_p), resident support, 2 row tiles --
    N, f_in, f_out = 128, 32, 64
    x = jax.random.normal(k_x, (N, f_in), jnp.float32)
    adj = jax.random.uniform(k_adj, (N, N), jnp.float32)
    weight, bias = init_params(k_p, f_in, f_out)

    out = jax.block_until_ready(gcn_conv(x, adj, weight, bias))
    assert out.shape == (N, f_out)

    # Reference with the same bf16 rounding the kernel applies (tight check).
    x32 = x.astype(jnp.bfloat16).astype(jnp.float32)
    w32 = weight.astype(jnp.bfloat16).astype(jnp.float32)
    sup_ref = (x32 @ w32).astype(jnp.bfloat16).astype(jnp.float32)
    adj32 = adj.astype(jnp.bfloat16).astype(jnp.float32)
    ref_bf16 = adj32 @ sup_ref + bias[None, :]
    assert jnp.allclose(out, ref_bf16, atol=2e-2, rtol=1e-2)

    # Loose check against full-fp32 math (bf16 streaming costs ~1e-2 rel).
    ref_f32 = adj @ (x @ weight) + bias[None, :]
    assert jnp.allclose(out, ref_f32, atol=2.5e-1, rtol=5e-2)

    # --- Test 2: order B (f_in_p < f_out_p), multiple k and row tiles --------
    N2, f_in2, f_out2 = 256, 48, 160
    x2 = jax.random.normal(k_x2, (N2, f_in2), jnp.float32)
    adj2 = jax.random.uniform(k_adj2, (N2, N2), jnp.float32)
    weight2, bias2 = init_params(k_p2, f_in2, f_out2)

    out2 = jax.block_until_ready(gcn_conv(x2, adj2, weight2, bias2, k_tile=128))
    assert out2.shape == (N2, f_out2)
    ref2 = adj2 @ (x2 @ weight2) + bias2[None, :]
    assert jnp.allclose(out2, ref2, atol=5e-1, rtol=5e-2)

    print("KERNEL_OK")
</pallas_src>

<mosaic_0001>
module attributes {stable_mosaic.version = 11 : i64} {
  func.func @_agg_kernel_resident(%arg0: i32, %arg1: i32, %arg2: memref<64x128xbf16, #tpu.memory_space<vmem>>, %arg3: memref<128x128xbf16, #tpu.memory_space<vmem>>, %arg4: memref<1x128xf32, #tpu.memory_space<vmem>>, %arg5: memref<64x128xf32, #tpu.memory_space<vmem>>, %arg6: memref<64x128xf32, #tpu.memory_space<vmem>>) attributes {dimension_semantics = [#tpu.dimension_semantics<parallel>, #tpu.dimension_semantics<arbitrary>], iteration_bounds = array<i64: 2, 1>, scalar_prefetch = 0 : i64, scratch_operands = 1 : i64, tpu.core_type = #tpu.core_type<tc>, window_params = [{transform_indices = @transform_0, window_bounds = array<i64: 64, 128>}, {pipeline_mode = #tpu.pipeline_mode<synchronous>, transform_indices = @transform_1, window_bounds = array<i64: 128, 128>}, {pipeline_mode = #tpu.pipeline_mode<synchronous>, transform_indices = @transform_2, window_bounds = array<i64: 1, 128>}, {transform_indices = @transform_3, window_bounds = array<i64: 64, 128>}]} {
    %c0_i32 = arith.constant 0 : i32
    %0 = arith.cmpi eq, %arg1, %c0_i32 : i32
    %1 = arith.extui %0 : i1 to i32
    %c0_i32_0 = arith.constant 0 : i32
    %2 = arith.cmpi ne, %1, %c0_i32_0 : i32
    scf.if %2 {
      %cst_9 = arith.constant 0.000000e+00 : f32
      %15 = vector.broadcast %cst_9 : f32 to vector<64x128xf32>
      %c0_10 = arith.constant 0 : index
      %c0_11 = arith.constant 0 : index
      %16 = vector.load %arg6[%c0_10, %c0_11] : memref<64x128xf32, #tpu.memory_space<vmem>>, vector<64x128xf32>
      tpu.vector_store %arg6[%c0_10, %c0_11], %15 {strides = array<i32>} : memref<64x128xf32, #tpu.memory_space<vmem>>, vector<64x128xf32>,
    } else {
    }
    %c128_i32 = arith.constant 128 : i32
    %3 = arith.muli %arg1, %c128_i32 : i32
    %4 = tpu.assume_multiple %3, 128 : i32
    %c0 = arith.constant 0 : index
    %c0_1 = arith.constant 0 : index
    %5 = vector.load %arg6[%c0, %c0_1] : memref<64x128xf32, #tpu.memory_space<vmem>>, vector<64x128xf32>
    %c0_2 = arith.constant 0 : index
    %c0_3 = arith.constant 0 : index
    %6 = vector.load %arg2[%c0_2, %c0_3] : memref<64x128xbf16, #tpu.memory_space<vmem>>, vector<64x128xbf16>
    %7 = arith.index_cast %4 : i32 to index
    %c0_4 = arith.constant 0 : index
    %8 = vector.load %arg3[%7, %c0_4] : memref<128x128xbf16, #tpu.memory_space<vmem>>, vector<128x128xbf16>
    %cst = arith.constant dense<0.000000e+00> : vector<64x128xf32>
    %9 = tpu.matmul %6, %8, %cst {dimension_numbers = #tpu.dot_dimension_numbers<[1], [0], [0], [1], [0, 0, 1, 1], [], []>} : vector<64x128xbf16>, vector<128x128xbf16>, vector<64x128xf32> -> vector<64x128xf32>
    %10 = arith.addf %5, %9 : vector<64x128xf32>
    %c0_5 = arith.constant 0 : index
    %c0_6 = arith.constant 0 : index
    %11 = vector.load %arg6[%c0_5, %c0_6] : memref<64x128xf32, #tpu.memory_space<vmem>>, vector<64x128xf32>
    tpu.vector_store %arg6[%c0_5, %c0_6], %10 {strides = array<i32>} : memref<64x128xf32, #tpu.memory_space<vmem>>, vector<64x128xf32>,
    %c0_i32_7 = arith.constant 0 : i32
    %12 = arith.cmpi eq, %arg1, %c0_i32_7 : i32
    %13 = arith.extui %12 : i1 to i32
    %c0_i32_8 = arith.constant 0 : i32
    %14 = arith.cmpi ne, %13, %c0_i32_8 : i32
    scf.if %14 {
      %c0_9 = arith.constant 0 : index
      %c0_10 = arith.constant 0 : index
      %15 = vector.load %arg6[%c0_9, %c0_10] : memref<64x128xf32, #tpu.memory_space<vmem>>, vector<64x128xf32>
      %c0_11 = arith.constant 0 : index
      %c0_12 = arith.constant 0 : index
      %16 = vector.load %arg4[%c0_11, %c0_12] : memref<1x128xf32, #tpu.memory_space<vmem>>, vector<1x128xf32>
      %17 = vector.broadcast %16 : vector<1x128xf32> to vector<64x128xf32>
      %18 = arith.addf %15, %17 : vector<64x128xf32>
      %c0_13 = arith.constant 0 : index
      %c0_14 = arith.constant 0 : index
      %19 = vector.load %arg5[%c0_13, %c0_14] : memref<64x128xf32, #tpu.memory_space<vmem>>, vector<64x128xf32>
      tpu.vector_store %arg5[%c0_13, %c0_14], %18 {strides = array<i32>} : memref<64x128xf32, #tpu.memory_space<vmem>>, vector<64x128xf32>,
    } else {
    }
    return
  }
  func.func @transform_0(%arg0: i32, %arg1: i32) -> (i32, i32) {
    %c0_i32 = arith.constant 0 : i32
    return %arg0, %arg1 : i32, i32
  }
  func.func @transform_1(%arg0: i32, %arg1: i32) -> (i32, i32) {
    %c0_i32 = arith.constant 0 : i32
    %c0_i32_0 = arith.constant 0 : i32
    %c0_i32_1 = arith.constant 0 : i32
    return %c0_i32, %c0_i32_0 : i32, i32
  }
  func.func @transform_2(%arg0: i32, %arg1: i32) -> (i32, i32) {
    %c0_i32 = arith.constant 0 : i32
    %c0_i32_0 = arith.constant 0 : i32
    %c0_i32_1 = arith.constant 0 : i32
    return %c0_i32, %c0_i32_0 : i32, i32
  }
  func.func @transform_3(%arg0: i32, %arg1: i32) -> (i32, i32) {
    %c0_i32 = arith.constant 0 : i32
    %c0_i32_0 = arith.constant 0 : i32
    return %arg0, %c0_i32 : i32, i32
  }
}

</mosaic_0001>

<bundles_post_ra>
// kernel: tpu_custom_call.1
= control target key start
LH: loop header
LB: loop body
LE: loop exit
PB: predicated region body
PF: predicated region fallthrough
CT: control target
= control target key end

     0   :  { %8 = vsyncpa [#allocation4], 0  ;;  %s1104_s0 = inlined_call_operand.hbm [shape: bf16[128,128], index: 0, kind: input, shape index: {}]   ;;  %s1105_s1 = inlined_call_operand.hbm [shape: bf16[128,128], index: 1, kind: input, shape index: {}]   ;;  %s1106_s2 = inlined_call_operand.vmem [shape: f32[1,128], index: 2, kind: input, shape index: {}]   ;;  %s1107_s3 = inlined_call_operand.hbm [shape: f32[128,128], index: 3, kind: output, shape index: {}]  }
   0x1   :  { %10 = vsyncpa [#allocation4 + $0x1], 0 }
   0x2   :  { %11 = vsyncpa [#allocation7], 0 }
   0x3   :  { %12 = vsyncpa [#allocation5], 0 }
   0x4   :  { %14 = vsyncpa [#allocation5 + $0x1], 0  ;;  %s907_s12 = smov 0   ;;  %s909_s13 = smov 0  }
   0x5   :  { %s911_s14 = smov 0   ;;  %s913_s15 = smov 0  }
   0x6   :  { %s915_s16 = smov 0   ;;  %s917_s17 = smov 0  }
   0x7 LB: > { %s567_s18 = sadd.s32 4294967295, %s878_s17   ;;  %s568_s19 = sadd.s32 4294967294, %s878_s17   ;;  %s878_s17 = sphi %s917_s17, %s20_s17   ;;  %s874_s16 = sphi %s915_s16, %s1129_s16   ;;  %s870_s15 = sphi %s913_s15, %s1128_s15   ;;  %s866_s14 = sphi %s911_s14, %s1127_s14   ;;  %s862_s13 = sphi %s909_s13, %s1126_s13   ;;  %s858_s12 = sphi %s907_s12, %s1125_s12  }
   0x8   : > { %p54_p0 = scmp.ne.s32.totalorder %s862_s13, %s858_s12  ;;  %p941_p1 = scmp.eq.s32.totalorder %s567_s18, 0 }
   0x9   : > { %p945_p2 = scmp.eq.s32.totalorder %s567_s18, 1  ;;  %p126_p3 = scmp.eq.s32.totalorder %s568_s19, 1 }
   0xa   : > { %p951_p4 = por %p941_p1, %p54_p0  ;;  %p569_p5 = scmp.ge.s32.totalorder %s878_s17, 1 }
   0xb   : > { %p956_p6 = por %p126_p3, %p54_p0  ;;  %p133_p7 = scmp.lt.s32.totalorder %s878_s17, 3 }
   0xc   : > { %s1113_s22 = scalar_select %p951_p4, 1, 0 }
   0xd   : > { %s1114_s23 = scalar_select %p956_p6, 1, 0 }
   0xe   : > { %p961_p8 = pnand %p569_p5, %p133_p7  ;;  %s880_s25 = smov [#allocation6]  }
   0xf   : > { %s145_s26 = sshll.u32 %s880_s25, 4  ;;  %s32_s28 = sadd.s32 1, %s874_s16  ;;  %s146_s26 = int_to_ptr.vmem [resolvable:$true] %s145_s26 }
  0x10   : > { %p659_p9 = pneg %p961_p8  ;;  %s751_s29 = scalar_lea.vmem %s146_s26, 1024 }
  0x11   : > { %p752_p13 = scmp.ne.s32.totalorder %s146_s26, %s751_s29  ;;  %p759_p5 = scmp.lt.s32.totalorder %s146_s26, %s146_s26 }
  0x12   : > { %p970_p11 = pnand %p659_p9, %p941_p1  ;;  %p760_p7 = scmp.lt.s32.totalorder %s751_s29, %s751_s29 }
  0x14   : > { %p742_p12 = pneg %p970_p11  ;;  %p761_p6 = por %p760_p7, %p759_p5 }
  0x16   : > { %p754_p0 = pnand %p752_p13, %p742_p12 }
  0x18   : > { %p755_p3 = pneg %p754_p0 }
  0x1a   : > { %p762_p4 = pnand %p761_p6, %p755_p3 }
  0x1c   : > { %765 = shalt.err (!%p762_p4)
}
  0x1d   : > { %s1109_s30 = smov 64   ;;  %s1110_s4 = smov 4  }
  0x1e   : > { %662 = dma.hbm_to_vmem [thread:$0]  (!%p970_p11), %s1105_s1, 1024, %s146_s26, [#allocation7], %s1109_s30, %s1109_s30, %s1110_s4  }
  0x1f   : > { %p34_p4 = scmp.ge.s32.totalorder %s32_s28, 2  ;;  %s41_s7 = sadd.s32 1, %s866_s14 }
  0x20   : > { %p48_p6 = scmp.ne.s32.totalorder %s866_s14, %s862_s13  ;;  %p49_p9 = scmp.eq.s32.totalorder %s878_s17, 0 }
  0x21   : > { %s1131_s28 = smov (%p34_p4, %s32_s28), 0  ;;  %p672_p0 = scmp.lt.s32.totalorder %s878_s17, 2 }
  0x22   : > { %p991_p12 = por %p49_p9, %p48_p6  ;;  %p997_p13 = por %p945_p2, %p48_p6 }
  0x23   : > { %s36_s10 = ssub.s32 %s874_s16, %s1131_s28  ;;  %s162_s11 = sand.u32 1, %s866_s14  }
  0x24   : > { %p39_p11 = scmp.eq.s32.totalorder %s36_s10, 0  ;;  %s572_s18 = sshll.u32 %s162_s11, 5 }
  0x25   : > { %s597_s25 = sshll.u32 %s874_s16, 9  ;;  %s166_s5 = scalar_lea.vmem [#allocation3], %s572_s18 }
  0x26   : > { %s1006_s19 = scalar_select %p39_p11, %s866_s14, %s41_s7  }
  0x27   : > { %s173_s29 = scalar_lea.hbm %s1104_s0, %s597_s25  ;;  %s174_s6 = sshll.u32 %s166_s5, 4  ;;  %s175_s6 = int_to_ptr.vmem [resolvable:$true] %s174_s6 }
  0x28   : > { %p1014_p2 = pnand %p672_p0, %p991_p12  ;;  %s163_s30 = scalar_lea.sflag [#allocation4], %s162_s11 }
  0x29   : > { %s779_s10 = scalar_lea.vmem %s175_s6, 512  ;;  %s883_s7 = smov [#allocation3]  }
  0x2a   : > { %p768_p3 = pneg %p1014_p2  ;;  %p780_p5 = scmp.ne.s32.totalorder %s175_s6, %s779_s10 }
  0x2b   : > { %s784_s4 = sshll.u32 %s883_s7, 4  ;;  %s785_s4 = int_to_ptr.vmem [resolvable:$false] %s784_s4 }
  0x2c   : > { %p782_p7 = pnand %p780_p5, %p768_p3  ;;  %s786_s25 = scalar_lea.vmem %s785_s4, 1024 }
  0x2d   : > { %p787_p6 = scmp.lt.s32.totalorder %s175_s6, %s785_s4  ;;  %p788_p9 = scmp.lt.s32.totalorder %s786_s25, %s779_s10 }
  0x2e   : > { %p783_p4 = pneg %p782_p7 }
  0x2f   : > { %p789_p11 = por %p788_p9, %p787_p6 }
  0x31   : > { %p790_p10 = pnand %p789_p11, %p783_p4 }
  0x33   : > { %793 = shalt.err (!%p790_p10)
}
  0x34   : > { %s1120_s8 = smov 4   ;;  %s1121_s18 = smov 64  }
  0x35   : > { %666 = dma.hbm_to_vmem [thread:$0]  (!%p1014_p2), %s173_s29, 512, %s175_s6, %s163_s30, %s1121_s18, %s1121_s18, %s1120_s8  }
  0x36   : > { %186 = sbr.rel (%p961_p8) target bundleno = 310 (0x136), region = 32  ;;  %s1028_s11 = sand.u32 (!%p961_p8), 1, %s862_s13  }
  0x37   : > { %s576_s4 = sshll.u32 (!%p961_p8), %s1028_s11, 5  ;;  %s189_s26 = scalar_lea.sflag (!%p961_p8), [#allocation4], %s1028_s11 }
  0x38   : > { %s1032_s27 = scalar_lea.vmem (!%p961_p8), [#allocation3], %s576_s4  ;;  %p1122_p10 = scmp.ne.s32.totalorder (!%p961_p8), %s1113_s22, 0 }
  0x3b   : > { %845 = dma.done.wait (%p1122_p10), %s189_s26, 512  }
  0x3c   : > { %847 = vsyncadd (%p1122_p10), %s189_s26, 4294966784 }
  0x3d   : > { %849 = dma.done.wait (%p941_p1), [#allocation7], 1024  }
  0x3e   : > { %851 = vsyncadd (%p941_p1), [#allocation7], 4294966272  ;;  %v728_v0 = vld [vmem:[#allocation6 + $0x38] sm:$0xff]   ;;  %v729_v1 = vld [vmem:[#allocation6 + $0x30] sm:$0xff]   ;;  %s578_s20 = sshll.u32 %s1028_s11, 6  ;;  %s598_s5 = sshll.u32 %s870_s15, 10 }
  0x3f   : > { %611 = vmatprep.subr.bf16.mxu0 %v728_v0  ;;  %635 = vmatprep.subr.bf16.mxu1 %v728_v0  ;;  %v730_v2 = vld [vmem:[#allocation6 + $0x28] sm:$0xff]   ;;  %v731_v3 = vld [vmem:[#allocation6 + $0x20] sm:$0xff]   ;;  %v737_v5 = vld [vmem:[%s1032_s27 + $0x10] sm:$0xff]   ;;  %s218_s30 = scalar_lea.vmem [#allocation8], %s578_s20  ;;  %s1056_s10 = scalar_lea.hbm %s1107_s3, %s598_s5 }
  0x40   : > { %612 = vmatpush3.bf16.msra.mxu0 %v728_v0  ;;  %643 = vmatpush3.bf16.msra.mxu1 %v728_v0  ;;  %v736_v4 = vld [vmem:[%s1032_s27] sm:$0xff]   ;;  %v732_v6 = vld [vmem:[#allocation6 + $0x18] sm:$0xff]   ;;  %v733_v7 = vld [vmem:[#allocation6 + $0x10] sm:$0xff]   ;;  %s472_s29 = sshll.u32 %s218_s30, 4  ;;  %s459_s15 = scalar_lea.sflag [#allocation5], %s1028_s11  ;;  %s1051_s29 = int_to_ptr.vmem [resolvable:$true] %s472_s29 }
  0x41   : > { %613 = vmatprep.subr.bf16.mxu0 %v729_v1  ;;  %636 = vmatprep.subr.bf16.mxu1 %v729_v1  ;;  %v734_v8 = vld [vmem:[#allocation6 + $0x8] sm:$0xff]   ;;  %v735_v9 = vld [vmem:[#allocation6] sm:$0xff]   ;;  %v739_v11 = vld [vmem:[%s1032_s27 + $0x18] sm:$0xff]   ;;  %s794_s7 = scalar_lea.vmem %s1051_s29, 1024  ;;  %s884_s25 = smov [#allocation8]  }
  0x42   : > { %627 = vmatprep.mubr.bf16.mxu0 %v736_v4  ;;  %631 = vmatprep.mubr.bf16.mxu1 %v737_v5  ;;  %v738_v10 = vld [vmem:[%s1032_s27 + $0x8] sm:$0xff]   ;;  %v591_v12 = vld [vmem:[%s1106_s2] ss:$0 sm:$0xff]  ;;  %p795_p1 = scmp.ne.s32.totalorder %s1051_s29, %s794_s7  ;;  %s798_s8 = sshll.u32 %s884_s25, 4  ;;  %s799_s8 = int_to_ptr.vmem [resolvable:$false] %s798_s8 }
  0x43   : > { %s800_s18 = scalar_lea.vmem %s799_s8, 2048  ;;  %p801_p0 = scmp.lt.s32.totalorder %s1051_s29, %s799_s8 }
  0x44   : > { %614 = vmatpush3.bf16.msra.mxu0 %v729_v1  ;;  %644 = vmatpush3.bf16.msra.mxu1 %v729_v1  ;;  %p796_p8 = pnand %p795_p1, %p997_p13  ;;  %p802_p2 = scmp.lt.s32.totalorder %s800_s18, %s794_s7 }
  0x45   : > { %615 = vmatprep.subr.bf16.mxu0 %v730_v2  ;;  %637 = vmatprep.subr.bf16.mxu1 %v730_v2 }
  0x46   : > { %p797_p12 = pneg %p796_p8  ;;  %p803_p3 = por %p802_p2, %p801_p0 }
  0x48   : > { %616 = vmatpush3.bf16.msra.mxu0 %v730_v2  ;;  %645 = vmatpush3.bf16.msra.mxu1 %v730_v2  ;;  %p804_p5 = pnand %p803_p3, %p797_p12 }
  0x49   : > { %617 = vmatprep.subr.bf16.mxu0 %v731_v3  ;;  %638 = vmatprep.subr.bf16.mxu1 %v731_v3 }
  0x4c   : > { %618 = vmatpush3.bf16.msra.mxu0 %v731_v3  ;;  %646 = vmatpush3.bf16.msra.mxu1 %v731_v3 }
  0x4d   : > { %619 = vmatprep.subr.bf16.mxu0 %v732_v6  ;;  %639 = vmatprep.subr.bf16.mxu1 %v732_v6 }
  0x50   : > { %620 = vmatpush3.bf16.msra.mxu0 %v732_v6  ;;  %647 = vmatpush3.bf16.msra.mxu1 %v732_v6 }
  0x51   : > { %621 = vmatprep.subr.bf16.mxu0 %v733_v7  ;;  %640 = vmatprep.subr.bf16.mxu1 %v733_v7 }
  0x54   : > { %622 = vmatpush3.bf16.msra.mxu0 %v733_v7  ;;  %648 = vmatpush3.bf16.msra.mxu1 %v733_v7 }
  0x55   : > { %623 = vmatprep.subr.bf16.mxu0 %v734_v8  ;;  %641 = vmatprep.subr.bf16.mxu1 %v734_v8 }
  0x58   : > { %624 = vmatpush3.bf16.msra.mxu0 %v734_v8  ;;  %649 = vmatpush3.bf16.msra.mxu1 %v734_v8 }
  0x59   : > { %625 = vmatprep.subr.bf16.mxu0 %v735_v9  ;;  %642 = vmatprep.subr.bf16.mxu1 %v735_v9 }
  0x5c   : > { %626 = vmatpush3.bf16.msra.mxu0 %v735_v9  ;;  %650 = vmatpush3.bf16.msra.mxu1 %v735_v9 }
  0x5f   : > { %628 = vmatmul.mubr.bf16.vlgmr.msra.gmra.mxu0 %v738_v10  ;;  %632 = vmatmul.mubr.bf16.vlgmr.msra.gmra.mxu1 %v739_v11 }
 0x11f   : > { %v629_v13 = vpop.f32.mrf.mxu0  ;;  %v633_v14 = vpop.f32.mrf.mxu1 }
 0x120   : > { %v444_v15 = vadd.f32 %v629_v13, %v591_v12  ;;  %v448_v16 = vadd.f32 %v633_v14, %v591_v12 }
 0x121   : > { %v377_v17 = vpop.f32.mrf.mxu0  ;;  %v393_v18 = vpop.f32.mrf.mxu1 }
 0x122   : > { %452 = vst [vmem:[%s218_s30 + $0x10] sm:$0xff] %v444_v15  ;;  %456 = vst [vmem:[%s218_s30 + $0x30] sm:$0xff] %v448_v16  ;;  %v442_v19 = vadd.f32 %v591_v12, %v377_v17  ;;  %v446_v20 = vadd.f32 %v591_v12, %v393_v18 }
 0x123   : > { %v630_v21 = vpop.f32.mrf.mxu0  ;;  %v634_v22 = vpop.f32.mrf.mxu1 }
 0x124   : > { %450 = vst [vmem:[%s218_s30] sm:$0xff] %v442_v19  ;;  %454 = vst [vmem:[%s218_s30 + $0x20] sm:$0xff] %v446_v20  ;;  %v445_v23 = vadd.f32 %v630_v21, %v591_v12  ;;  %v449_v24 = vadd.f32 %v634_v22, %v591_v12 }
 0x125   : > { %v380_v25 = vpop.f32.mrf.mxu0  ;;  %v396_v26 = vpop.f32.mrf.mxu1 }
 0x126   : > { %453 = vst [vmem:[%s218_s30 + $0x18] sm:$0xff] %v445_v23  ;;  %457 = vst [vmem:[%s218_s30 + $0x38] sm:$0xff] %v449_v24  ;;  %v443_v27 = vadd.f32 %v591_v12, %v380_v25  ;;  %v447_v28 = vadd.f32 %v591_v12, %v396_v26 }
 0x128   : > { %451 = vst [vmem:[%s218_s30 + $0x8] sm:$0xff] %v443_v27  ;;  %455 = vst [vmem:[%s218_s30 + $0x28] sm:$0xff] %v447_v28 }
 0x129   : > { %807 = shalt.err (!%p804_p5)
}
 0x12a   : > { %s808_s4 = scalar_lea.hbm %s1056_s10, 1024  ;;  %s812_s20 = scalar_lea.hbm %s1107_s3, 2048 }
 0x12b   : > { %p809_p7 = scmp.ne.s32.totalorder %s1056_s10, %s808_s4  ;;  %p813_p9 = scmp.lt.s32.totalorder %s1056_s10, %s1107_s3 }
 0x12c   : > { %p814_p11 = scmp.lt.s32.totalorder %s812_s20, %s808_s4 }
 0x12d   : > { %p810_p4 = pnand %p809_p7, %p997_p13 }
 0x12e   : > { %p815_p10 = por %p814_p11, %p813_p9 }
 0x12f   : > { %p811_p6 = pneg %p810_p4 }
 0x131   : > { %p816_p1 = pnand %p815_p10, %p811_p6 }
 0x133   : > { %819 = shalt.err (!%p816_p1)
}
 0x134   : > { %s885_s30 = smov 128   ;;  %s886_s5 = smov 8  }
 0x135   : > { %657 = dma.vmem_to_hbm [thread:$0]  (%p997_p13), %s1051_s29, 1024, %s1056_s10, %s459_s15, %s885_s30, %s885_s30, %s886_s5  }
 0x136 PF: > { %s487_s6 = sand.u32 1, %s858_s12   ;;  %p1123_p8 = scmp.ne.s32.totalorder %s1114_s23, 0 }
 0x137   : > { %p1124_p12 = scmp.ge.s32.totalorder %s878_s17, 2  ;;  %s488_s21 = scalar_lea.sflag [#allocation5], %s487_s6 }
 0x139   : > { %p668_p0 = pnand %p1124_p12, %p1123_p8 }
 0x13b   : > { %p669_p2 = pneg %p668_p0 }
 0x13d   : > { %853 = dma.done.wait (%p669_p2), %s488_s21, 1024  }
 0x13e   : > { %855 = vsyncadd (%p669_p2), %s488_s21, 4294966272  ;;  %s20_s17 = sadd.s32 1, %s878_s17   ;;  %s1125_s12 = smov %s862_s13 }
 0x13f   : > { %p17_p3 = scmp.ge.s32.totalorder %s20_s17, 4   ;;  %s1126_s13 = smov %s866_s14 }
 0x140   : > { %s1127_s14 = smov %s1006_s19  ;;  %s1128_s15 = smov %s874_s16 }
 0x141   : > { %s1129_s16 = smov %s1131_s28  ;;  %19 = sbr.rel (!%p17_p3) target bundleno = 7 (0x7), region = 90 }
 0x146   :  { %493 = vsyncpa [#allocation4], 1 }
 0x147   :  { %495 = vsyncpa [#allocation4 + $0x1], 1 }
 0x148   :  { %496 = vsyncpa [#allocation7], 1 }
 0x149   :  { %497 = vsyncpa [#allocation5], 1 }
 0x14a   :  { %499 = vsyncpa [#allocation5 + $0x1], 1 }

</bundles_post_ra>
